<compile_context>
chip_gen: v7x
topology: tpu7x:2x2x1
jax: 0.10.0
libtpu: 0.0.40
codegen_flags: <defaults>
</compile_context>

<pallas_src>
import functools

import jax
import jax.numpy as jnp
from jax.experimental import pallas as pl
from jax.experimental.pallas import tpu as pltpu

_SQRT_HALF = 0.7071067811865476  # 1/sqrt(2)
_VMEM_BUDGET = 24 << 20          # conservative resident-footprint budget (bytes)


def _gelu_exact(x):
    # torch nn.GELU() default: 0.5 * x * (1 + erf(x / sqrt(2)))
    return 0.5 * x * (1.0 + jax.lax.erf(x * _SQRT_HALF))


def _round_up(n, m):
    return ((n + m - 1) // m) * m


def _fused_mlp_kernel(x_ref, w1_ref, b1_ref, w2_ref, b2_ref, o_ref):
    # x_ref : (tm, in)                       row tile of the (flattened) backbone output
    # w1_ref: (in, width*hidden)             all branches' first Linear, packed on lanes
    # b1_ref: (1, width*hidden)              f32
    # w2_ref: (width*hidden, width*out)      block-diagonal second Linear (all branches)
    # b2_ref: (1, width*out)                 f32
    # o_ref : (tm, width*out)                all branches' outputs, packed on lanes

    # Leading nn.GELU(): computed ONCE per row tile, shared by every branch.
    # GELU runs in f32 on the VPU/EUP (v5e has no bf16 vector path); only the MXU
    # sees the weights' native dtype (bf16 weights -> native MXU path, f32 accumulate).
    g32 = _gelu_exact(x_ref[...].astype(jnp.float32))
    g = g32.astype(w1_ref.dtype)

    # First Linear of every branch in one MXU dot (K=in, N=width*hidden).
    h32 = jnp.dot(g, w1_ref[...], preferred_element_type=jnp.float32)
    h32 = _gelu_exact(h32 + b1_ref[...])
    h = h32.astype(w2_ref.dtype)

    # Second Linear of every branch in one MXU dot against block-diagonal W2,
    # then ONE full-slab lane-dense store (no per-branch vst.msk partial stores).
    y = jnp.dot(h, w2_ref[...], preferred_element_type=jnp.float32) + b2_ref[...]
    o_ref[...] = y.astype(o_ref.dtype)


def _resident_spec(shape):
    """BlockSpec for a grid-invariant input (weights/biases): constant index_map,
    single-buffered when the installed JAX exposes pipeline_mode (nothing to pipeline)."""
    index_map = lambda i, _n=len(shape): (0,) * _n
    if hasattr(pl, "Buffered"):
        try:
            return pl.BlockSpec(shape, index_map, pipeline_mode=pl.Buffered(1))
        except TypeError:  # older JAX without pipeline_mode kwarg
            pass
    return pl.BlockSpec(shape, index_map)


def _run_fused_heads(x2d, w1p, b1p, w2bd, b2p, *, tm_max=512):
    rows, input_size = x2d.shape
    wh = w1p.shape[1]            # width * hidden
    out_cols = w2bd.shape[1]     # width * output_size
    itemsize = x2d.dtype.itemsize

    # --- row tiling: balanced tiles, minimal padding, >=2 tiles for v7x megacore ---
    n_tiles = max(pl.cdiv(rows, tm_max), 2 if rows >= 16 else 1)
    tm = _round_up(pl.cdiv(rows, n_tiles), 8)

    # Shrink tm if the resident VMEM footprint would be uncomfortable
    # (v7x has only 64 MiB VMEM/TC; v5e's scoped default is 16 MiB).
    w_bytes = w1p.nbytes + b1p.nbytes + w2bd.nbytes + b2p.nbytes  # single-buffered

    def _tile_bytes(t):
        # x tile + out tile, double-buffered by the pipeline
        return 2 * t * input_size * itemsize + 2 * t * out_cols * itemsize

    while tm > 8 and w_bytes + _tile_bytes(tm) > _VMEM_BUDGET:
        tm = _round_up(max(8, tm // 2), 8)

    n_tiles = pl.cdiv(rows, tm)
    rows_p = n_tiles * tm
    if rows_p != rows:
        # Padded rows are zeros: GELU(0)=0, they propagate harmlessly and are sliced off.
        x2d = jnp.pad(x2d, ((0, rows_p - rows), (0, 0)))

    footprint = w_bytes + _tile_bytes(tm)
    vmem_limit = int(min(48 << 20, max(32 << 20, 2 * footprint)))

    flops = rows_p * (2 * input_size * wh + 2 * wh * out_cols)
    transcendentals = rows_p * (input_size + wh)
    bytes_accessed = (rows_p * input_size * itemsize + w_bytes
                      + rows_p * out_cols * itemsize)

    out = pl.pallas_call(
        _fused_mlp_kernel,
        out_shape=jax.ShapeDtypeStruct((rows_p, out_cols), x2d.dtype),
        grid=(n_tiles,),
        in_specs=[
            pl.BlockSpec((tm, input_size), lambda i: (i, 0)),   # x row tile (pipelined)
            _resident_spec((input_size, wh)),                    # W1 packed
            _resident_spec((1, wh)),                             # b1 packed
            _resident_spec((wh, out_cols)),                      # W2 block-diagonal
            _resident_spec((1, out_cols)),                       # b2 packed
        ],
        out_specs=pl.BlockSpec((tm, out_cols), lambda i: (i, 0)),
        compiler_params=pltpu.CompilerParams(
            dimension_semantics=("parallel",),
            vmem_limit_bytes=vmem_limit),
        cost_estimate=pl.CostEstimate(
            flops=flops,
            transcendentals=transcendentals,
            bytes_accessed=bytes_accessed),
    )(x2d, w1p, b1p, w2bd, b2p)
    return out[:rows]


def prepack_params(params, *, dtype=None):
    """Pack per-branch params ONCE (outside the forward path) for the fused kernel.

    params: list of `width` tuples (w1 (in,hidden), b1 (1,hidden), w2 (hidden,out), b2 (1,out)).
    dtype:  weight dtype fed to the MXU (e.g. jnp.bfloat16); biases stay f32.
    Returns (w1p, b1p, w2bd, b2p).
    """
    wdt = dtype if dtype is not None else params[0][0].dtype
    width = len(params)
    hidden = params[0][2].shape[0]
    out = params[0][2].shape[1]

    w1p = jnp.concatenate([p[0] for p in params], axis=1).astype(wdt)          # (in, W*H)
    b1p = jnp.concatenate([p[1] for p in params], axis=1).astype(jnp.float32)  # (1, W*H)

    # Block-diagonal second layer: one MXU dot + one lane-dense store covers every branch.
    # TODO(synk): for very large `width` the width^2*hidden*out zero-block flops/VMEM may
    # warrant falling back to a per-branch loop with in-register lane concat.
    w2bd = jnp.zeros((width * hidden, width * out), wdt)
    for i, p in enumerate(params):
        w2bd = w2bd.at[i * hidden:(i + 1) * hidden, i * out:(i + 1) * out].set(
            p[2].astype(wdt))
    b2p = jnp.concatenate([p[3] for p in params], axis=1).astype(jnp.float32)  # (1, W*out)
    return (w1p, b1p, w2bd, b2p)


def mlp_task_head_forward(x, packed_params, *, width, hidden_dim, output_size):
    """x: (batch, seq, input_size) -> (batch, width*seq, output_size) if width > 1,
    else (batch, seq, output_size)."""
    # backbone.forward(x): the backbone is an injected module; identity here.
    # TODO(synk): plug in a real backbone if one is specified.
    out = x
    b, s, d = out.shape
    x2d = out.reshape(b * s, d)

    y2d = _run_fused_heads(x2d, *packed_params)

    if width == 1:
        return y2d.reshape(b, s, output_size)
    # Branch w lives in lanes [w*out, (w+1)*out); re-layout to torch.cat(dim=-2).
    # TODO(synk): if output_size >= 128, emit the cat(dim=-2) layout directly from the
    # kernel (2D grid over (branch, row tile)) and delete this extra HBM round-trip.
    y = y2d.reshape(b, s, width, output_size).transpose(0, 2, 1, 3)
    return y.reshape(b, width * s, output_size)


def make_params(key, input_size, hidden_dim, output_size, width):
    """Deterministic synthetic weights. Torch Linear stores W as (out, in) and computes
    x @ W.T + b; we store the transposed (in, out) matrix directly."""
    params = []
    for i in range(width):
        k = jax.random.fold_in(key, i)
        k1, k2, k3, k4 = jax.random.split(k, 4)
        w1 = 0.02 * jax.random.normal(k1, (input_size, hidden_dim), jnp.float32)
        b1 = 0.02 * jax.random.normal(k2, (1, hidden_dim), jnp.float32)
        w2 = 0.02 * jax.random.normal(k3, (hidden_dim, output_size), jnp.float32)
        b2 = 0.02 * jax.random.normal(k4, (1, output_size), jnp.float32)
        params.append((w1, b1, w2, b2))
    return params


if __name__ == "__main__":
    # Small shapes: batch=2, seq=8, input_size=32, hidden_dim=64, output_size=16,
    # num_layers=2, width=2.
    batch, seq = 2, 8
    input_size, hidden_dim, output_size = 32, 64, 16
    width = 2

    key = jax.random.PRNGKey(0)
    kx, kp = jax.random.split(key)
    x = jax.random.normal(kx, (batch, seq, input_size), jnp.float32)
    params = make_params(kp, input_size, hidden_dim, output_size, width)

    # Pure-JAX reference (torch erf-GELU semantics).
    def ref_branch(x2d, w1, b1, w2, b2):
        g = lambda t: 0.5 * t * (1.0 + jax.lax.erf(t / jnp.sqrt(2.0)))
        h = g(x2d)
        h = g(h @ w1 + b1)
        return h @ w2 + b2

    x2d = x.reshape(batch * seq, input_size)
    ref = jnp.concatenate(
        [ref_branch(x2d, *p).reshape(batch, seq, output_size) for p in params],
        axis=-2)

    fwd = jax.jit(functools.partial(mlp_task_head_forward, width=width,
                                    hidden_dim=hidden_dim,
                                    output_size=output_size))

    # Params are pre-packed ONCE outside the forward path (no per-call packing copies).
    # (1) f32 weights: exact parity with the erf-GELU reference.
    packed_f32 = prepack_params(params)
    y = fwd(x, packed_f32)
    jax.block_until_ready(y)
    assert y.shape == (batch, width * seq, output_size), y.shape
    assert jnp.allclose(y, ref, atol=1e-5, rtol=1e-5), \
        float(jnp.max(jnp.abs(y - ref)))

    # (2) bf16 weights (native MXU path, f32 accumulation): small documented delta.
    packed_bf16 = prepack_params(params, dtype=jnp.bfloat16)
    y16 = fwd(x, packed_bf16)
    jax.block_until_ready(y16)
    assert y16.shape == (batch, width * seq, output_size), y16.shape
    assert jnp.allclose(y16, ref, atol=5e-3, rtol=5e-2), \
        float(jnp.max(jnp.abs(y16 - ref)))

    print("KERNEL_OK")
</pallas_src>

<mosaic_0001>
module attributes {stable_mosaic.version = 11 : i64} {
  func.func @_fused_mlp_kernel(%arg0: i32, %arg1: memref<8x32xf32, #tpu.memory_space<vmem>>, %arg2: memref<32x128xf32, #tpu.memory_space<vmem>>, %arg3: memref<1x128xf32, #tpu.memory_space<vmem>>, %arg4: memref<128x32xf32, #tpu.memory_space<vmem>>, %arg5: memref<1x32xf32, #tpu.memory_space<vmem>>, %arg6: memref<8x32xf32, #tpu.memory_space<vmem>>) attributes {dimension_semantics = [#tpu.dimension_semantics<parallel>], iteration_bounds = array<i64: 2>, scalar_prefetch = 0 : i64, scratch_operands = 0 : i64, tpu.core_type = #tpu.core_type<tc>, window_params = [{transform_indices = @transform_0, window_bounds = array<i64: 8, 32>}, {pipeline_mode = #tpu.pipeline_mode<synchronous>, transform_indices = @transform_1, window_bounds = array<i64: 32, 128>}, {pipeline_mode = #tpu.pipeline_mode<synchronous>, transform_indices = @transform_2, window_bounds = array<i64: 1, 128>}, {pipeline_mode = #tpu.pipeline_mode<synchronous>, transform_indices = @transform_3, window_bounds = array<i64: 128, 32>}, {pipeline_mode = #tpu.pipeline_mode<synchronous>, transform_indices = @transform_4, window_bounds = array<i64: 1, 32>}, {transform_indices = @transform_5, window_bounds = array<i64: 8, 32>}]} {
    %c0 = arith.constant 0 : index
    %c0_0 = arith.constant 0 : index
    %0 = vector.load %arg1[%c0, %c0_0] : memref<8x32xf32, #tpu.memory_space<vmem>>, vector<8x32xf32>
    %cst = arith.constant 5.000000e-01 : f32
    %1 = vector.broadcast %cst : f32 to vector<8x32xf32>
    %2 = arith.mulf %1, %0 : vector<8x32xf32>
    %cst_1 = arith.constant 0.707106769 : f32
    %3 = vector.broadcast %cst_1 : f32 to vector<8x32xf32>
    %4 = arith.mulf %0, %3 : vector<8x32xf32>
    %5 = math.erf %4 : vector<8x32xf32>
    %cst_2 = arith.constant 1.000000e+00 : f32
    %6 = vector.broadcast %cst_2 : f32 to vector<8x32xf32>
    %7 = arith.addf %6, %5 : vector<8x32xf32>
    %8 = arith.mulf %2, %7 : vector<8x32xf32>
    %c0_3 = arith.constant 0 : index
    %c0_4 = arith.constant 0 : index
    %9 = vector.load %arg2[%c0_3, %c0_4] : memref<32x128xf32, #tpu.memory_space<vmem>>, vector<32x128xf32>
    %cst_5 = arith.constant dense<0.000000e+00> : vector<8x128xf32>
    %10 = tpu.matmul %8, %9, %cst_5 {dimension_numbers = #tpu.dot_dimension_numbers<[1], [0], [0], [1], [0, 0, 1, 1], [], []>} : vector<8x32xf32>, vector<32x128xf32>, vector<8x128xf32> -> vector<8x128xf32>
    %c0_6 = arith.constant 0 : index
    %c0_7 = arith.constant 0 : index
    %11 = vector.load %arg3[%c0_6, %c0_7] : memref<1x128xf32, #tpu.memory_space<vmem>>, vector<1x128xf32>
    %12 = vector.broadcast %11 : vector<1x128xf32> to vector<8x128xf32>
    %13 = arith.addf %10, %12 : vector<8x128xf32>
    %cst_8 = arith.constant 5.000000e-01 : f32
    %14 = vector.broadcast %cst_8 : f32 to vector<8x128xf32>
    %15 = arith.mulf %14, %13 : vector<8x128xf32>
    %cst_9 = arith.constant 0.707106769 : f32
    %16 = vector.broadcast %cst_9 : f32 to vector<8x128xf32>
    %17 = arith.mulf %13, %16 : vector<8x128xf32>
    %18 = math.erf %17 : vector<8x128xf32>
    %cst_10 = arith.constant 1.000000e+00 : f32
    %19 = vector.broadcast %cst_10 : f32 to vector<8x128xf32>
    %20 = arith.addf %19, %18 : vector<8x128xf32>
    %21 = arith.mulf %15, %20 : vector<8x128xf32>
    %c0_11 = arith.constant 0 : index
    %c0_12 = arith.constant 0 : index
    %22 = vector.load %arg4[%c0_11, %c0_12] : memref<128x32xf32, #tpu.memory_space<vmem>>, vector<128x32xf32>
    %cst_13 = arith.constant dense<0.000000e+00> : vector<8x32xf32>
    %23 = tpu.matmul %21, %22, %cst_13 {dimension_numbers = #tpu.dot_dimension_numbers<[1], [0], [0], [1], [0, 0, 1, 1], [], []>} : vector<8x128xf32>, vector<128x32xf32>, vector<8x32xf32> -> vector<8x32xf32>
    %c0_14 = arith.constant 0 : index
    %c0_15 = arith.constant 0 : index
    %24 = vector.load %arg5[%c0_14, %c0_15] : memref<1x32xf32, #tpu.memory_space<vmem>>, vector<1x32xf32>
    %25 = vector.broadcast %24 : vector<1x32xf32> to vector<8x32xf32>
    %26 = arith.addf %23, %25 : vector<8x32xf32>
    %c0_16 = arith.constant 0 : index
    %c0_17 = arith.constant 0 : index
    %27 = vector.load %arg6[%c0_16, %c0_17] : memref<8x32xf32, #tpu.memory_space<vmem>>, vector<8x32xf32>
    tpu.vector_store %arg6[%c0_16, %c0_17], %26 {strides = array<i32>} : memref<8x32xf32, #tpu.memory_space<vmem>>, vector<8x32xf32>,
    return
  }
  func.func @transform_0(%arg0: i32) -> (i32, i32) {
    %c0_i32 = arith.constant 0 : i32
    %c0_i32_0 = arith.constant 0 : i32
    return %arg0, %c0_i32 : i32, i32
  }
  func.func @transform_1(%arg0: i32) -> (i32, i32) {
    %c0_i32 = arith.constant 0 : i32
    %c0_i32_0 = arith.constant 0 : i32
    %c0_i32_1 = arith.constant 0 : i32
    return %c0_i32, %c0_i32_0 : i32, i32
  }
  func.func @transform_2(%arg0: i32) -> (i32, i32) {
    %c0_i32 = arith.constant 0 : i32
    %c0_i32_0 = arith.constant 0 : i32
    %c0_i32_1 = arith.constant 0 : i32
    return %c0_i32, %c0_i32_0 : i32, i32
  }
  func.func @transform_3(%arg0: i32) -> (i32, i32) {
    %c0_i32 = arith.constant 0 : i32
    %c0_i32_0 = arith.constant 0 : i32
    %c0_i32_1 = arith.constant 0 : i32
    return %c0_i32, %c0_i32_0 : i32, i32
  }
  func.func @transform_4(%arg0: i32) -> (i32, i32) {
    %c0_i32 = arith.constant 0 : i32
    %c0_i32_0 = arith.constant 0 : i32
    %c0_i32_1 = arith.constant 0 : i32
    return %c0_i32, %c0_i32_0 : i32, i32
  }
  func.func @transform_5(%arg0: i32) -> (i32, i32) {
    %c0_i32 = arith.constant 0 : i32
    %c0_i32_0 = arith.constant 0 : i32
    return %arg0, %c0_i32 : i32, i32
  }
}

</mosaic_0001>

<bundles_post_ra>
// kernel: mlp_task_head_forward.1
= control target key start
LH: loop header
LB: loop body
LE: loop exit
PB: predicated region body
PF: predicated region fallthrough
CT: control target
= control target key end

     0   :  { %s629_s18 = smov 0   ;;  %s721_s0 = inlined_call_operand.vmem [shape: f32[16,32], index: 0, kind: input, shape index: {}]   ;;  %s722_s1 = inlined_call_operand.vmem [shape: f32[32,128], index: 1, kind: input, shape index: {}]   ;;  %s723_s2 = inlined_call_operand.vmem [shape: f32[1,128], index: 2, kind: input, shape index: {}]   ;;  %s724_s3 = inlined_call_operand.vmem [shape: f32[128,32], index: 3, kind: input, shape index: {}]   ;;  %s725_s4 = inlined_call_operand.vmem [shape: f32[1,32], index: 4, kind: input, shape index: {}]   ;;  %s726_s5 = inlined_call_operand.vmem [shape: f32[16,32], index: 5, kind: output, shape index: {}]  }
   0x1 LB: > { %s463_s19 = sadd.s32 4294967295, %s594_s18   ;;  %p467_p0 = scmp.ge.s32.totalorder %s594_s18, 1  ;;  %s594_s18 = sphi %s629_s18, %s15_s18  }
   0x2   : > { %p186_p1 = scmp.lt.s32.totalorder %s594_s18, 3 }
   0x4   : > { %p187_p2 = pnand %p467_p0, %p186_p1 }
   0x5   : > { %v226_v0 = vld [vmem:[%s722_s1] sm:$0xff] (!%p187_p2)  ;;  %v227_v1 = vld [vmem:[%s722_s1 + $0x8] sm:$0xff] (!%p187_p2)  ;;  %v228_v2 = vld [vmem:[%s722_s1 + $0x10] sm:$0xff] (!%p187_p2)  ;;  %v596_v3 = vmov (!%p187_p2), 0.0|0.0   ;;  %vm597_vm0 = vmmov (!%p187_p2), 0   ;;  %v598_v6 = vmov (!%p187_p2), 0.0  }
   0x6   : > { %190 = sbr.rel (%p187_p2) target bundleno = 480 (0x1e0), region = 40  ;;  %543 = vmatprep.subr.bf16.mxu0 (!%p187_p2), %v596_v3  ;;  %v544_v4 = vpack.c.bf16 (!%p187_p2), %v227_v1, %v226_v0  ;;  %v229_v5 = vld [vmem:[%s722_s1 + $0x18] sm:$0xff] (!%p187_p2)  ;;  %505 = vmatprep.mubr.msk.f32.mxu0 (!%p187_p2), %vm597_vm0, %v598_v6  ;;  %p212_p3 = scmp.lt.s32.totalorder (!%p187_p2), %s463_s19, 1  ;;  %v316_v7 = vld [vmem:[%s724_s3] sm:$0xff] (!%p187_p2)  ;;  %v317_v8 = vld [vmem:[%s724_s3 + $0x8] sm:$0xff] (!%p187_p2)  ;;  %vm237_vm1 = vcmask (!%p187_p2), 261120  }
   0x7   : > { %549 = vmatprep.subr.bf16.mxu1 (!%p187_p2), %v596_v3  ;;  %v550_v9 = vpack.c.bf16 (!%p187_p2), %v317_v8, %v316_v7  ;;  %v318_v10 = vld [vmem:[%s724_s3 + $0x10] sm:$0xff] (!%p187_p2)  ;;  %v319_v11 = vld [vmem:[%s724_s3 + $0x18] sm:$0xff] (!%p187_p2)  ;;  %540 = vmatprep.mubr.msk.f32.mxu1 (!%p187_p2), %vm597_vm0, %v598_v6  ;;  %v547_v12 = vpack.c.bf16 (!%p187_p2), %v229_v5, %v228_v2  ;;  %v320_v14 = vld [vmem:[%s724_s3 + $0x20] sm:$0xff] (!%p187_p2) }
   0x8   : > { %545 = vmatpush3.bf16.msra.mxu0 (!%p187_p2), %v544_v4  ;;  %v553_v13 = vpack.c.bf16 (!%p187_p2), %v319_v11, %v318_v10  ;;  %v321_v15 = vld [vmem:[%s724_s3 + $0x28] sm:$0xff] (!%p187_p2)  ;;  %v322_v23 = vld [vmem:[%s724_s3 + $0x30] sm:$0xff] (!%p187_p2)  ;;  %v323_v24 = vld [vmem:[%s724_s3 + $0x38] sm:$0xff] (!%p187_p2) }
   0x9   : > { %546 = vmatprep.subr.bf16.mxu0 (!%p187_p2), %v596_v3  ;;  %551 = vmatpush3.bf16.msra.mxu1 (!%p187_p2), %v550_v9  ;;  %v556_v18 = vpack.c.bf16 (!%p187_p2), %v321_v15, %v320_v14  ;;  %v559_v25 = vpack.c.bf16 (!%p187_p2), %v323_v24, %v322_v23  ;;  %v324_v26 = vld [vmem:[%s724_s3 + $0x40] sm:$0xff] (!%p187_p2)  ;;  %v325_v27 = vld [vmem:[%s724_s3 + $0x48] sm:$0xff] (!%p187_p2)  ;;  %v326_v29 = vld [vmem:[%s724_s3 + $0x50] sm:$0xff] (!%p187_p2) }
   0xa   : > { %552 = vmatprep.subr.bf16.mxu1 (!%p187_p2), %v596_v3  ;;  %v562_v28 = vpack.c.bf16 (!%p187_p2), %v325_v27, %v324_v26  ;;  %v327_v30 = vld [vmem:[%s724_s3 + $0x58] sm:$0xff] (!%p187_p2)  ;;  %v328_v32 = vld [vmem:[%s724_s3 + $0x60] sm:$0xff] (!%p187_p2)  ;;  %v329_v33 = vld [vmem:[%s724_s3 + $0x68] sm:$0xff] (!%p187_p2) }
   0xb   : > { %v565_v31 = vpack.c.bf16 (!%p187_p2), %v327_v30, %v326_v29  ;;  %v568_v34 = vpack.c.bf16 (!%p187_p2), %v329_v33, %v328_v32  ;;  %v330_v35 = vld [vmem:[%s724_s3 + $0x70] sm:$0xff] (!%p187_p2)  ;;  %v331_v36 = vld [vmem:[%s724_s3 + $0x78] sm:$0xff] (!%p187_p2)  ;;  %v470_v38 = vld [vmem:[%s723_s2] ss:$0 sm:$0xff] (!%p187_p2) }
   0xc   : > { %548 = vmatpush3.bf16.msra.mxu0 (!%p187_p2), %v547_v12  ;;  %v571_v37 = vpack.c.bf16 (!%p187_p2), %v331_v36, %v330_v35  ;;  %v472_v47 = vld [vmem:[%s725_s4] ss:$0 sm:$0xff] (!%p187_p2) }
   0xd   : > { %s728_s19 = smov (!%p212_p3, %s463_s19), 1  ;;  %554 = vmatpush3.bf16.msra.mxu1 %v553_v13 }
   0xe   : > { %s468_s11 = sshll.u32 %s728_s19, 3  ;;  %555 = vmatprep.subr.bf16.mxu1 %v596_v3 }
   0xf   : > { %s215_s20 = scalar_lea.vmem %s721_s0, %s468_s11  ;;  %s219_s25 = scalar_lea.vmem %s726_s5, %s468_s11 }
  0x10   : > { %v220_v16 = vld [vmem:[%s215_s20] sm:$0xff] }
  0x11   : > { %v222_v17 = vmul.f32 0.70710677, %v220_v16  ;;  %557 = vmatpush3.bf16.msra.mxu1 %v556_v18  ;;  %v221_v19 = vmul.f32 0.5, %v220_v16 }
  0x12   : > { %558 = vmatprep.subr.bf16.mxu1 %v596_v3 }
  0x13   : > { %584 = verf.f32 %v222_v17 }
  0x15   : > { %560 = vmatpush3.bf16.msra.mxu1 %v559_v25 }
  0x16   : > { %561 = vmatprep.subr.bf16.mxu1 %v596_v3 }
  0x19   : > { %563 = vmatpush3.bf16.msra.mxu1 %v562_v28 }
  0x1a   : > { %564 = vmatprep.subr.bf16.mxu1 %v596_v3 }
  0x1d   : > { %v585_v20 = vpop.eup %584  ;;  %566 = vmatpush3.bf16.msra.mxu1 %v565_v31 }
  0x1e   : > { %v224_v21 = vadd.f32 1.0, %v585_v20  ;;  %567 = vmatprep.subr.bf16.mxu1 %v596_v3 }
  0x20   : > { %v225_v22 = vmul.f32 %v224_v21, %v221_v19 }
  0x21   : > { %569 = vmatpush3.bf16.msra.mxu1 %v568_v34 }
  0x22   : > { %506 = vmatmul.mubr.msk.f32.vlgmr.msra.gmra.mrb[0].mxu0 %vm237_vm1, %v225_v22  ;;  %570 = vmatprep.subr.bf16.mxu1 %v596_v3 }
  0x25   : > { %572 = vmatpush3.bf16.msra.mxu1 %v571_v37 }
  0xf5   : > { %v307_v39 = vpop.f32.mrb[0].mxu0 }
  0xf6   : > { %v308_v40 = vadd.f32 %v470_v38, %v307_v39  ;;  %v507_v41 = vpop.f32.mrb[1].mxu0 }
  0xf8   : > { %v312_v42 = vmul.f32 0.70710677, %v308_v40  ;;  %v311_v44 = vmul.f32 0.5, %v308_v40 }
  0xfa   : > { %586 = verf.f32 %v312_v42 }
 0x104   : > { %v587_v43 = vpop.eup %586 }
 0x105   : > { %v314_v45 = vadd.f32 1.0, %v587_v43 }
 0x107   : > { %v315_v46 = vmul.f32 %v314_v45, %v311_v44 }
 0x109   : > { %541 = vmatmul.mubr.f32.vlgmr.msra.gmra.mrb[0].mxu1 %v315_v46 }
 0x1dc   : > { %v405_v48 = vpop.f32.mrb[0].mxu1 }
 0x1dd   : > { %v406_v49 = vadd.f32 %v472_v47, %v405_v48  ;;  %v542_v50 = vpop.f32.mrb[1].mxu1 }
 0x1df   : > { %409 = vst.msk [vmem:[%s219_s25] sm:$0xff] %vm237_vm1, %v406_v49 }
 0x1e0 PF: > { %s15_s18 = sadd.s32 1, %s594_s18  }
 0x1e1   : > { %p12_p4 = scmp.ge.s32.totalorder %s15_s18, 4  }
 0x1e3   :  { %14 = sbr.rel (!%p12_p4) target bundleno = 1 (0x1), region = 70 }

</bundles_post_ra>
